<compile_context>
chip_gen: v6e
topology: v6e:2x2x1
jax: 0.10.0
libtpu: 0.0.40
codegen_flags: <defaults>
</compile_context>

<pallas_src>
import math

import jax
import jax.numpy as jnp
from jax.experimental import pallas as pl
from jax.experimental.pallas import tpu as pltpu

_LANE = 128
_SMOOTH = 1e-05
_VMEM_DATA_BUDGET = 12 * 1024 * 1024   # streamed double-buffers + accumulators
_VMEM_LIMIT_BYTES = 32 * 1024 * 1024   # scoped-VMEM limit; safe on v5e/v6e/v7x
_MIN_COLS_PER_CORE = 2048              # don't split tiny column counts across TCs


def _row_expansion(B, D):
    """Smallest k with (B*k) % 8 == 0 and k | D.

    Reshaping (B, D) -> (B*k, D/k) wrapper-side fills all 8 vreg sublanes even
    for small batch sizes (with B=2 only 2/8 sublanes would do useful work)."""
    k_min = 8 // math.gcd(B, 8)
    for m in range(1, 9):
        k = k_min * m
        if D % k == 0:
            return k
    return 1   # fallback: still correct, just sublane-padded


def _plan_tiles(R, D2, sum_itemsize, max_tile_cols=None):
    """Pick (n_cores, TD, steps_per_core, ragged) for a (R, D2) layout."""
    r_pad = max(8, ((R + 7) // 8) * 8)             # honest sublane-padded bytes
    per_col = r_pad * (2 * sum_itemsize + 4 * 4)   # 2x dbl-buffered inputs + 4 f32 accs
    td_max = max(_LANE, _VMEM_DATA_BUDGET // per_col)
    if max_tile_cols is not None:
        td_max = max(_LANE, min(td_max, int(max_tile_cols)))

    def largest_div128(cols):
        start = (min(td_max, cols) // _LANE) * _LANE
        for td in range(start, _LANE - 1, -_LANE):
            if cols % td == 0:
                return td
        return None

    # 2-TensorCore split of the column axis (v7x megacore).  On 1-TC chips the
    # leading "parallel" axis just runs sequentially, which is harmless.
    if D2 % 2 == 0 and D2 // 2 >= _MIN_COLS_PER_CORE:
        td = largest_div128(D2 // 2)
        if td is not None:
            return 2, td, (D2 // 2) // td, False

    if D2 <= td_max:                      # single full-width block
        return 1, D2, 1, False
    td = largest_div128(D2)               # snap TD to a divisor of D2: no ragged tail
    if td is not None:
        return 1, td, D2 // td, False
    td = (td_max // _LANE) * _LANE        # ragged tail: mask accumulated terms only
    return 1, td, pl.cdiv(D2, td), True


def _make_kernel(TD, D2, steps_per_core, ragged):
    def kernel(dis_ref, tdist_ref, mask_ref, tgt_ref,
               out_bdr_ref, out_bce_ref, out_inter_ref, out_den_ref,
               acc_bdr, acc_bce, acc_inter, acc_den):
        i = pl.program_id(1)

        @pl.when(i == 0)
        def _init():
            acc_bdr[...] = jnp.zeros_like(acc_bdr)
            acc_bce[...] = jnp.zeros_like(acc_bce)
            acc_inter[...] = jnp.zeros_like(acc_inter)
            acc_den[...] = jnp.zeros_like(acc_den)

        # Stream the native dtype from HBM, compute in f32.
        # TODO(synk): PyTorch runs the boundary branch in float64; TPU has no
        # f64 vector math, so it is computed in float32 here.
        xb = dis_ref[...].astype(jnp.float32)
        zb = tdist_ref[...].astype(jnp.float32)
        xm = mask_ref[...].astype(jnp.float32)
        zm = tgt_ref[...].astype(jnp.float32)

        # Boundary branch: (x - z)^2 + stable BCE-with-logits.
        diff = xb - zb
        bce_b = (jnp.maximum(xb, 0.0) - xb * zb
                 + jnp.log1p(jnp.exp(-jnp.abs(xb))))
        term_b = diff * diff + bce_b

        # Mask branch: one exp(-|x|) feeds both the BCE term and the sigmoid.
        e = jnp.exp(-jnp.abs(xm))
        bce_m = jnp.maximum(xm, 0.0) - xm * zm + jnp.log1p(e)
        inv1pe = 1.0 / (1.0 + e)                        # exact; EUP has slack
        s = jnp.where(xm >= 0.0, inv1pe, e * inv1pe)    # sigmoid(xm)
        prod = s * zm
        den = s + zm

        if ragged:
            # Only the quantities that reach the accumulators need masking.
            lane = jax.lax.broadcasted_iota(jnp.int32, term_b.shape, 1)
            col = (pl.program_id(0) * steps_per_core + i) * TD + lane
            valid = col < D2
            term_b = jnp.where(valid, term_b, 0.0)
            bce_m = jnp.where(valid, bce_m, 0.0)
            prod = jnp.where(valid, prod, 0.0)
            den = jnp.where(valid, den, 0.0)

        # Element-wise VPU accumulation; cross-lane (XLU) reduction happens
        # only once, in the epilogue.
        acc_bdr[...] += term_b
        acc_bce[...] += bce_m
        acc_inter[...] += prod
        acc_den[...] += den

        @pl.when(i == pl.num_programs(1) - 1)
        def _finalize():
            out_bdr_ref[...] = jnp.sum(acc_bdr[...], axis=1, keepdims=True)
            out_bce_ref[...] = jnp.sum(acc_bce[...], axis=1, keepdims=True)
            out_inter_ref[...] = jnp.sum(acc_inter[...], axis=1, keepdims=True)
            out_den_ref[...] = jnp.sum(acc_den[...], axis=1, keepdims=True)

    return kernel


def _fused_partials(dis2, tdist2, mask2, tgt2, max_tile_cols=None):
    """Streams the four (R, D2) tensors once and returns per-core per-row
    partial sums: (bdr, bce, inter, den), each of shape (n_cores, R, 1)."""
    R, D2 = dis2.shape
    sum_itemsize = sum(int(a.dtype.itemsize) for a in (dis2, tdist2, mask2, tgt2))
    n_cores, TD, steps_pc, ragged = _plan_tiles(R, D2, sum_itemsize, max_tile_cols)
    kernel = _make_kernel(TD, D2, steps_pc, ragged)

    in_spec = pl.BlockSpec((R, TD), lambda c, i: (0, c * steps_pc + i))
    out_spec = pl.BlockSpec((None, R, 1), lambda c, i: (c, 0, 0))
    row_shape = jax.ShapeDtypeStruct((n_cores, R, 1), jnp.float32)

    return pl.pallas_call(
        kernel,
        out_shape=(row_shape, row_shape, row_shape, row_shape),
        grid_spec=pltpu.PrefetchScalarGridSpec(
            num_scalar_prefetch=0,
            grid=(n_cores, steps_pc),
            in_specs=[in_spec, in_spec, in_spec, in_spec],
            out_specs=[out_spec, out_spec, out_spec, out_spec],
            scratch_shapes=[pltpu.VMEM((R, TD), jnp.float32) for _ in range(4)],
        ),
        compiler_params=pltpu.CompilerParams(
            dimension_semantics=("parallel", "arbitrary"),
            vmem_limit_bytes=_VMEM_LIMIT_BYTES),
    )(dis2, tdist2, mask2, tgt2)


def boundary_with_mask_loss2(inputs, target, target_distance, task_ids, t, N,
                             taskloss_flg=False, *, bf16_targets=False,
                             max_tile_cols=None):
    """JAX/Pallas equivalent of BoundarywithMaskLoss2.forward.

    inputs: dict with 'dis' (boundary-distance logits) and 'mask' (mask
    logits), both NCHW; target / target_distance have matching shapes.
    task_ids / taskloss_flg are accepted for signature parity but unused
    (BCEDiceLoss as given ignores them)."""
    del task_ids, taskloss_flg
    dis = inputs["dis"]
    mask = inputs["mask"]
    B = dis.shape[0]
    D = int(dis.size) // B

    if bf16_targets:
        # Halves HBM bytes for the two target streams (HBM-bound v5e/v6e).
        # 0/1 masks are lossless in bf16; distance maps lose ~3 decimal digits,
        # hence opt-in.
        target = target.astype(jnp.bfloat16)
        target_distance = target_distance.astype(jnp.bfloat16)

    # Sublane fill: (B, D) -> (B*k, D/k); each sample owns k contiguous rows.
    k = _row_expansion(B, D)
    R, D2 = B * k, D // k
    dis2 = dis.reshape(R, D2)
    tdist2 = target_distance.reshape(R, D2)
    mask2 = mask.reshape(R, D2)
    tgt2 = target.reshape(R, D2)

    bdr_rows, bce_rows, inter_rows, den_rows = _fused_partials(
        dis2, tdist2, mask2, tgt2, max_tile_cols=max_tile_cols)

    # Tiny wrapper-side combine (core partials + row regrouping + weighting).
    inv_n = 1.0 / float(B * D)
    loss_boundary = jnp.sum(bdr_rows) * inv_n
    bce_mask = jnp.sum(bce_rows) * inv_n

    inter = jnp.sum(inter_rows, axis=0).reshape(B, k).sum(axis=1)   # (B,)
    den = jnp.sum(den_rows, axis=0).reshape(B, k).sum(axis=1)       # (B,)
    dice = (2.0 * inter + _SMOOTH) / (den + _SMOOTH)
    dice_loss = 1.0 - jnp.mean(dice)
    loss_mask = 0.5 * bce_mask + dice_loss

    w = jnp.float32(t) / jnp.float32(N)
    return (1.0 - w) * loss_boundary + w * loss_mask


def reference_loss(dis, mask, target, target_distance, t, N):
    """Pure-JAX float32 reference mirroring BoundarywithMaskLoss2.forward."""
    x_b = dis.astype(jnp.float32)
    z_b = target_distance.astype(jnp.float32)
    x_m = mask.astype(jnp.float32)
    z_m = target.astype(jnp.float32)

    def bce_with_logits(x, z):
        return jnp.mean(jnp.maximum(x, 0.0) - x * z
                        + jnp.log1p(jnp.exp(-jnp.abs(x))))

    loss_boundary = jnp.mean((x_b - z_b) ** 2) + bce_with_logits(x_b, z_b)

    bce_m = bce_with_logits(x_m, z_m)
    num = z_m.shape[0]
    s = jax.nn.sigmoid(x_m).reshape(num, -1)
    z = z_m.reshape(num, -1)
    inter = jnp.sum(s * z, axis=1)
    dice = (2.0 * inter + _SMOOTH) / (jnp.sum(s, axis=1) + jnp.sum(z, axis=1)
                                      + _SMOOTH)
    dice_loss = 1.0 - jnp.mean(dice)
    loss_mask = 0.5 * bce_m + dice_loss

    w = jnp.float32(t) / jnp.float32(N)
    return (1.0 - w) * loss_boundary + w * loss_mask


if __name__ == "__main__":
    key = jax.random.PRNGKey(0)
    k1, k2, k3 = jax.random.split(key, 3)
    t_step, N_total = 3, 10
    task_ids = jnp.zeros((2,), dtype=jnp.int32)

    def make_inputs(shape, key):
        a, b, c, d = jax.random.split(key, 4)
        dis = jax.random.normal(a, shape, dtype=jnp.float32)
        mask = jax.random.normal(b, shape, dtype=jnp.float32)
        target = (jax.random.uniform(c, shape) > 0.5).astype(jnp.float32)
        tdist = jax.random.uniform(d, shape, dtype=jnp.float32)
        return dis, mask, target, tdist

    def check(got, want, rtol, atol=1e-6):
        got = jax.block_until_ready(got)
        want = jax.block_until_ready(want)
        assert jnp.isfinite(got), got
        assert jnp.allclose(got, want, rtol=rtol, atol=atol), (got, want)

    # 1) Small config (B=2, C=4, 16x16): sublane-fill reshape, single block.
    dis, mask, target, tdist = make_inputs((2, 4, 16, 16), k1)
    loss = boundary_with_mask_loss2({"dis": dis, "mask": mask}, target, tdist,
                                    task_ids, t_step, N_total)
    ref = reference_loss(dis, mask, target, tdist, t_step, N_total)
    check(loss, ref, rtol=3e-4)

    # 2) Larger config with a forced small tile: exercises the 2-TensorCore
    #    column split and the multi-step accumulator grid.
    dis2_, mask2_, target2_, tdist2_ = make_inputs((2, 4, 64, 64), k2)
    loss2 = boundary_with_mask_loss2({"dis": dis2_, "mask": mask2_}, target2_,
                                     tdist2_, task_ids, t_step, N_total,
                                     max_tile_cols=512)
    ref2 = reference_loss(dis2_, mask2_, target2_, tdist2_, t_step, N_total)
    check(loss2, ref2, rtol=3e-4)

    # 3) Ragged-tail path (no multiple-of-128 divisor under the forced cap).
    dis3_, mask3_, target3_, tdist3_ = make_inputs((2, 3, 16, 16), k3)
    loss3 = boundary_with_mask_loss2({"dis": dis3_, "mask": mask3_}, target3_,
                                     tdist3_, task_ids, t_step, N_total,
                                     max_tile_cols=128)
    ref3 = reference_loss(dis3_, mask3_, target3_, tdist3_, t_step, N_total)
    check(loss3, ref3, rtol=3e-4)

    # 4) bf16 streaming path (bf16 logits + bf16 targets), loose tolerance.
    loss4 = boundary_with_mask_loss2(
        {"dis": dis2_.astype(jnp.bfloat16), "mask": mask2_.astype(jnp.bfloat16)},
        target2_, tdist2_, task_ids, t_step, N_total, bf16_targets=True)
    check(loss4, ref2, rtol=5e-2, atol=1e-3)

    print("KERNEL_OK")
</pallas_src>

<mosaic_0001>
module attributes {stable_mosaic.version = 11 : i64} {
  func.func @kernel(%arg0: i32, %arg1: i32, %arg2: memref<8x256xf32, #tpu.memory_space<vmem>>, %arg3: memref<8x256xf32, #tpu.memory_space<vmem>>, %arg4: memref<8x256xf32, #tpu.memory_space<vmem>>, %arg5: memref<8x256xf32, #tpu.memory_space<vmem>>, %arg6: memref<1x8x1xf32, #tpu.memory_space<vmem>>, %arg7: memref<1x8x1xf32, #tpu.memory_space<vmem>>, %arg8: memref<1x8x1xf32, #tpu.memory_space<vmem>>, %arg9: memref<1x8x1xf32, #tpu.memory_space<vmem>>, %arg10: memref<8x256xf32, #tpu.memory_space<vmem>>, %arg11: memref<8x256xf32, #tpu.memory_space<vmem>>, %arg12: memref<8x256xf32, #tpu.memory_space<vmem>>, %arg13: memref<8x256xf32, #tpu.memory_space<vmem>>) attributes {dimension_semantics = [#tpu.dimension_semantics<parallel>, #tpu.dimension_semantics<arbitrary>], iteration_bounds = array<i64: 1, 1>, scalar_prefetch = 0 : i64, scratch_operands = 4 : i64, tpu.core_type = #tpu.core_type<tc>, window_params = [{transform_indices = @transform_0, window_bounds = array<i64: 8, 256>}, {transform_indices = @transform_1, window_bounds = array<i64: 8, 256>}, {transform_indices = @transform_2, window_bounds = array<i64: 8, 256>}, {transform_indices = @transform_3, window_bounds = array<i64: 8, 256>}, {transform_indices = @transform_4, window_bounds = array<i64: 1, 8, 1>}, {transform_indices = @transform_5, window_bounds = array<i64: 1, 8, 1>}, {transform_indices = @transform_6, window_bounds = array<i64: 1, 8, 1>}, {transform_indices = @transform_7, window_bounds = array<i64: 1, 8, 1>}]} {
    %c0_i32 = arith.constant 0 : i32
    %0 = arith.cmpi eq, %arg1, %c0_i32 : i32
    %1 = arith.extui %0 : i1 to i32
    %c0_i32_0 = arith.constant 0 : i32
    %2 = arith.cmpi ne, %1, %c0_i32_0 : i32
    scf.if %2 {
      %cst_32 = arith.constant 0.000000e+00 : f32
      %55 = vector.broadcast %cst_32 : f32 to vector<8x256xf32>
      %c0_33 = arith.constant 0 : index
      %c0_34 = arith.constant 0 : index
      %56 = vector.load %arg10[%c0_33, %c0_34] : memref<8x256xf32, #tpu.memory_space<vmem>>, vector<8x256xf32>
      tpu.vector_store %arg10[%c0_33, %c0_34], %55 {strides = array<i32>} : memref<8x256xf32, #tpu.memory_space<vmem>>, vector<8x256xf32>,
      %cst_35 = arith.constant 0.000000e+00 : f32
      %57 = vector.broadcast %cst_35 : f32 to vector<8x256xf32>
      %c0_36 = arith.constant 0 : index
      %c0_37 = arith.constant 0 : index
      %58 = vector.load %arg11[%c0_36, %c0_37] : memref<8x256xf32, #tpu.memory_space<vmem>>, vector<8x256xf32>
      tpu.vector_store %arg11[%c0_36, %c0_37], %57 {strides = array<i32>} : memref<8x256xf32, #tpu.memory_space<vmem>>, vector<8x256xf32>,
      %cst_38 = arith.constant 0.000000e+00 : f32
      %59 = vector.broadcast %cst_38 : f32 to vector<8x256xf32>
      %c0_39 = arith.constant 0 : index
      %c0_40 = arith.constant 0 : index
      %60 = vector.load %arg12[%c0_39, %c0_40] : memref<8x256xf32, #tpu.memory_space<vmem>>, vector<8x256xf32>
      tpu.vector_store %arg12[%c0_39, %c0_40], %59 {strides = array<i32>} : memref<8x256xf32, #tpu.memory_space<vmem>>, vector<8x256xf32>,
      %cst_41 = arith.constant 0.000000e+00 : f32
      %61 = vector.broadcast %cst_41 : f32 to vector<8x256xf32>
      %c0_42 = arith.constant 0 : index
      %c0_43 = arith.constant 0 : index
      %62 = vector.load %arg13[%c0_42, %c0_43] : memref<8x256xf32, #tpu.memory_space<vmem>>, vector<8x256xf32>
      tpu.vector_store %arg13[%c0_42, %c0_43], %61 {strides = array<i32>} : memref<8x256xf32, #tpu.memory_space<vmem>>, vector<8x256xf32>,
    } else {
    }
    %c0 = arith.constant 0 : index
    %c0_1 = arith.constant 0 : index
    %3 = vector.load %arg2[%c0, %c0_1] : memref<8x256xf32, #tpu.memory_space<vmem>>, vector<8x256xf32>
    %c0_2 = arith.constant 0 : index
    %c0_3 = arith.constant 0 : index
    %4 = vector.load %arg3[%c0_2, %c0_3] : memref<8x256xf32, #tpu.memory_space<vmem>>, vector<8x256xf32>
    %c0_4 = arith.constant 0 : index
    %c0_5 = arith.constant 0 : index
    %5 = vector.load %arg4[%c0_4, %c0_5] : memref<8x256xf32, #tpu.memory_space<vmem>>, vector<8x256xf32>
    %c0_6 = arith.constant 0 : index
    %c0_7 = arith.constant 0 : index
    %6 = vector.load %arg5[%c0_6, %c0_7] : memref<8x256xf32, #tpu.memory_space<vmem>>, vector<8x256xf32>
    %7 = arith.subf %3, %4 : vector<8x256xf32>
    %cst = arith.constant 0.000000e+00 : f32
    %8 = vector.broadcast %cst : f32 to vector<8x256xf32>
    %9 = arith.maximumf %3, %8 : vector<8x256xf32>
    %10 = arith.mulf %3, %4 : vector<8x256xf32>
    %11 = arith.subf %9, %10 : vector<8x256xf32>
    %12 = math.absf %3 : vector<8x256xf32>
    %cst_8 = arith.constant 0.000000e+00 : f32
    %13 = vector.broadcast %cst_8 : f32 to vector<8x256xf32>
    %14 = arith.subf %13, %12 : vector<8x256xf32>
    %15 = math.exp %14 : vector<8x256xf32>
    %16 = math.log1p %15 : vector<8x256xf32>
    %17 = arith.addf %11, %16 : vector<8x256xf32>
    %18 = arith.mulf %7, %7 : vector<8x256xf32>
    %19 = arith.addf %18, %17 : vector<8x256xf32>
    %20 = math.absf %5 : vector<8x256xf32>
    %cst_9 = arith.constant 0.000000e+00 : f32
    %21 = vector.broadcast %cst_9 : f32 to vector<8x256xf32>
    %22 = arith.subf %21, %20 : vector<8x256xf32>
    %23 = math.exp %22 : vector<8x256xf32>
    %cst_10 = arith.constant 0.000000e+00 : f32
    %24 = vector.broadcast %cst_10 : f32 to vector<8x256xf32>
    %25 = arith.maximumf %5, %24 : vector<8x256xf32>
    %26 = arith.mulf %5, %6 : vector<8x256xf32>
    %27 = arith.subf %25, %26 : vector<8x256xf32>
    %28 = math.log1p %23 : vector<8x256xf32>
    %29 = arith.addf %27, %28 : vector<8x256xf32>
    %cst_11 = arith.constant 1.000000e+00 : f32
    %30 = vector.broadcast %cst_11 : f32 to vector<8x256xf32>
    %31 = arith.addf %30, %23 : vector<8x256xf32>
    %cst_12 = arith.constant 1.000000e+00 : f32
    %32 = vector.broadcast %cst_12 : f32 to vector<8x256xf32>
    %33 = arith.divf %32, %31 : vector<8x256xf32>
    %cst_13 = arith.constant 0.000000e+00 : f32
    %34 = vector.broadcast %cst_13 : f32 to vector<8x256xf32>
    %35 = arith.cmpf oge, %5, %34 : vector<8x256xf32>
    %36 = arith.mulf %23, %33 : vector<8x256xf32>
    %37 = arith.select %35, %33, %36 : vector<8x256xi1>, vector<8x256xf32>
    %38 = arith.mulf %37, %6 : vector<8x256xf32>
    %39 = arith.addf %37, %6 : vector<8x256xf32>
    %c0_14 = arith.constant 0 : index
    %c0_15 = arith.constant 0 : index
    %40 = vector.load %arg10[%c0_14, %c0_15] : memref<8x256xf32, #tpu.memory_space<vmem>>, vector<8x256xf32>
    %41 = arith.addf %40, %19 : vector<8x256xf32>
    %c0_16 = arith.constant 0 : index
    %c0_17 = arith.constant 0 : index
    %42 = vector.load %arg10[%c0_16, %c0_17] : memref<8x256xf32, #tpu.memory_space<vmem>>, vector<8x256xf32>
    tpu.vector_store %arg10[%c0_16, %c0_17], %41 {strides = array<i32>} : memref<8x256xf32, #tpu.memory_space<vmem>>, vector<8x256xf32>,
    %c0_18 = arith.constant 0 : index
    %c0_19 = arith.constant 0 : index
    %43 = vector.load %arg11[%c0_18, %c0_19] : memref<8x256xf32, #tpu.memory_space<vmem>>, vector<8x256xf32>
    %44 = arith.addf %43, %29 : vector<8x256xf32>
    %c0_20 = arith.constant 0 : index
    %c0_21 = arith.constant 0 : index
    %45 = vector.load %arg11[%c0_20, %c0_21] : memref<8x256xf32, #tpu.memory_space<vmem>>, vector<8x256xf32>
    tpu.vector_store %arg11[%c0_20, %c0_21], %44 {strides = array<i32>} : memref<8x256xf32, #tpu.memory_space<vmem>>, vector<8x256xf32>,
    %c0_22 = arith.constant 0 : index
    %c0_23 = arith.constant 0 : index
    %46 = vector.load %arg12[%c0_22, %c0_23] : memref<8x256xf32, #tpu.memory_space<vmem>>, vector<8x256xf32>
    %47 = arith.addf %46, %38 : vector<8x256xf32>
    %c0_24 = arith.constant 0 : index
    %c0_25 = arith.constant 0 : index
    %48 = vector.load %arg12[%c0_24, %c0_25] : memref<8x256xf32, #tpu.memory_space<vmem>>, vector<8x256xf32>
    tpu.vector_store %arg12[%c0_24, %c0_25], %47 {strides = array<i32>} : memref<8x256xf32, #tpu.memory_space<vmem>>, vector<8x256xf32>,
    %c0_26 = arith.constant 0 : index
    %c0_27 = arith.constant 0 : index
    %49 = vector.load %arg13[%c0_26, %c0_27] : memref<8x256xf32, #tpu.memory_space<vmem>>, vector<8x256xf32>
    %50 = arith.addf %49, %39 : vector<8x256xf32>
    %c0_28 = arith.constant 0 : index
    %c0_29 = arith.constant 0 : index
    %51 = vector.load %arg13[%c0_28, %c0_29] : memref<8x256xf32, #tpu.memory_space<vmem>>, vector<8x256xf32>
    tpu.vector_store %arg13[%c0_28, %c0_29], %50 {strides = array<i32>} : memref<8x256xf32, #tpu.memory_space<vmem>>, vector<8x256xf32>,
    %c0_i32_30 = arith.constant 0 : i32
    %52 = arith.cmpi eq, %arg1, %c0_i32_30 : i32
    %53 = arith.extui %52 : i1 to i32
    %c0_i32_31 = arith.constant 0 : i32
    %54 = arith.cmpi ne, %53, %c0_i32_31 : i32
    scf.if %54 {
      %c0_32 = arith.constant 0 : index
      %c0_33 = arith.constant 0 : index
      %55 = vector.load %arg10[%c0_32, %c0_33] : memref<8x256xf32, #tpu.memory_space<vmem>>, vector<8x256xf32>
      %cst_34 = arith.constant dense<0.000000e+00> : vector<8xf32>
      %56 = vector.multi_reduction <add>, %55, %cst_34 [1] : vector<8x256xf32> to vector<8xf32>
      %57 = vector.shape_cast %56 : vector<8xf32> to vector<8x1xf32>
      %c0_35 = arith.constant 0 : index
      %c0_36 = arith.constant 0 : index
      %c0_37 = arith.constant 0 : index
      %58 = vector.load %arg6[%c0_35, %c0_36, %c0_37] : memref<1x8x1xf32, #tpu.memory_space<vmem>>, vector<1x8x1xf32>
      %59 = vector.shape_cast %58 : vector<1x8x1xf32> to vector<8x1xf32>
      %60 = vector.shape_cast %57 : vector<8x1xf32> to vector<1x8x1xf32>
      tpu.vector_store %arg6[%c0_35, %c0_36, %c0_37], %60 {strides = array<i32>} : memref<1x8x1xf32, #tpu.memory_space<vmem>>, vector<1x8x1xf32>,
      %c0_38 = arith.constant 0 : index
      %c0_39 = arith.constant 0 : index
      %61 = vector.load %arg11[%c0_38, %c0_39] : memref<8x256xf32, #tpu.memory_space<vmem>>, vector<8x256xf32>
      %cst_40 = arith.constant dense<0.000000e+00> : vector<8xf32>
      %62 = vector.multi_reduction <add>, %61, %cst_40 [1] : vector<8x256xf32> to vector<8xf32>
      %63 = vector.shape_cast %62 : vector<8xf32> to vector<8x1xf32>
      %c0_41 = arith.constant 0 : index
      %c0_42 = arith.constant 0 : index
      %c0_43 = arith.constant 0 : index
      %64 = vector.load %arg7[%c0_41, %c0_42, %c0_43] : memref<1x8x1xf32, #tpu.memory_space<vmem>>, vector<1x8x1xf32>
      %65 = vector.shape_cast %64 : vector<1x8x1xf32> to vector<8x1xf32>
      %66 = vector.shape_cast %63 : vector<8x1xf32> to vector<1x8x1xf32>
      tpu.vector_store %arg7[%c0_41, %c0_42, %c0_43], %66 {strides = array<i32>} : memref<1x8x1xf32, #tpu.memory_space<vmem>>, vector<1x8x1xf32>,
      %c0_44 = arith.constant 0 : index
      %c0_45 = arith.constant 0 : index
      %67 = vector.load %arg12[%c0_44, %c0_45] : memref<8x256xf32, #tpu.memory_space<vmem>>, vector<8x256xf32>
      %cst_46 = arith.constant dense<0.000000e+00> : vector<8xf32>
      %68 = vector.multi_reduction <add>, %67, %cst_46 [1] : vector<8x256xf32> to vector<8xf32>
      %69 = vector.shape_cast %68 : vector<8xf32> to vector<8x1xf32>
      %c0_47 = arith.constant 0 : index
      %c0_48 = arith.constant 0 : index
      %c0_49 = arith.constant 0 : index
      %70 = vector.load %arg8[%c0_47, %c0_48, %c0_49] : memref<1x8x1xf32, #tpu.memory_space<vmem>>, vector<1x8x1xf32>
      %71 = vector.shape_cast %70 : vector<1x8x1xf32> to vector<8x1xf32>
      %72 = vector.shape_cast %69 : vector<8x1xf32> to vector<1x8x1xf32>
      tpu.vector_store %arg8[%c0_47, %c0_48, %c0_49], %72 {strides = array<i32>} : memref<1x8x1xf32, #tpu.memory_space<vmem>>, vector<1x8x1xf32>,
      %c0_50 = arith.constant 0 : index
      %c0_51 = arith.constant 0 : index
      %73 = vector.load %arg13[%c0_50, %c0_51] : memref<8x256xf32, #tpu.memory_space<vmem>>, vector<8x256xf32>
      %cst_52 = arith.constant dense<0.000000e+00> : vector<8xf32>
      %74 = vector.multi_reduction <add>, %73, %cst_52 [1] : vector<8x256xf32> to vector<8xf32>
      %75 = vector.shape_cast %74 : vector<8xf32> to vector<8x1xf32>
      %c0_53 = arith.constant 0 : index
      %c0_54 = arith.constant 0 : index
      %c0_55 = arith.constant 0 : index
      %76 = vector.load %arg9[%c0_53, %c0_54, %c0_55] : memref<1x8x1xf32, #tpu.memory_space<vmem>>, vector<1x8x1xf32>
      %77 = vector.shape_cast %76 : vector<1x8x1xf32> to vector<8x1xf32>
      %78 = vector.shape_cast %75 : vector<8x1xf32> to vector<1x8x1xf32>
      tpu.vector_store %arg9[%c0_53, %c0_54, %c0_55], %78 {strides = array<i32>} : memref<1x8x1xf32, #tpu.memory_space<vmem>>, vector<1x8x1xf32>,
    } else {
    }
    return
  }
  func.func @transform_0(%arg0: i32, %arg1: i32) -> (i32, i32) {
    %c1_i32 = arith.constant 1 : i32
    %0 = arith.muli %arg0, %c1_i32 : i32
    %1 = arith.addi %0, %arg1 : i32
    %c0_i32 = arith.constant 0 : i32
    %c0_i32_0 = arith.constant 0 : i32
    return %c0_i32, %1 : i32, i32
  }
  func.func @transform_1(%arg0: i32, %arg1: i32) -> (i32, i32) {
    %c1_i32 = arith.constant 1 : i32
    %0 = arith.muli %arg0, %c1_i32 : i32
    %1 = arith.addi %0, %arg1 : i32
    %c0_i32 = arith.constant 0 : i32
    %c0_i32_0 = arith.constant 0 : i32
    return %c0_i32, %1 : i32, i32
  }
  func.func @transform_2(%arg0: i32, %arg1: i32) -> (i32, i32) {
    %c1_i32 = arith.constant 1 : i32
    %0 = arith.muli %arg0, %c1_i32 : i32
    %1 = arith.addi %0, %arg1 : i32
    %c0_i32 = arith.constant 0 : i32
    %c0_i32_0 = arith.constant 0 : i32
    return %c0_i32, %1 : i32, i32
  }
  func.func @transform_3(%arg0: i32, %arg1: i32) -> (i32, i32) {
    %c1_i32 = arith.constant 1 : i32
    %0 = arith.muli %arg0, %c1_i32 : i32
    %1 = arith.addi %0, %arg1 : i32
    %c0_i32 = arith.constant 0 : i32
    %c0_i32_0 = arith.constant 0 : i32
    return %c0_i32, %1 : i32, i32
  }
  func.func @transform_4(%arg0: i32, %arg1: i32) -> (i32, i32, i32) {
    %c0_i32 = arith.constant 0 : i32
    %c0_i32_0 = arith.constant 0 : i32
    %c0_i32_1 = arith.constant 0 : i32
    return %arg0, %c0_i32, %c0_i32_0 : i32, i32, i32
  }
  func.func @transform_5(%arg0: i32, %arg1: i32) -> (i32, i32, i32) {
    %c0_i32 = arith.constant 0 : i32
    %c0_i32_0 = arith.constant 0 : i32
    %c0_i32_1 = arith.constant 0 : i32
    return %arg0, %c0_i32, %c0_i32_0 : i32, i32, i32
  }
  func.func @transform_6(%arg0: i32, %arg1: i32) -> (i32, i32, i32) {
    %c0_i32 = arith.constant 0 : i32
    %c0_i32_0 = arith.constant 0 : i32
    %c0_i32_1 = arith.constant 0 : i32
    return %arg0, %c0_i32, %c0_i32_0 : i32, i32, i32
  }
  func.func @transform_7(%arg0: i32, %arg1: i32) -> (i32, i32, i32) {
    %c0_i32 = arith.constant 0 : i32
    %c0_i32_0 = arith.constant 0 : i32
    %c0_i32_1 = arith.constant 0 : i32
    return %arg0, %c0_i32, %c0_i32_0 : i32, i32, i32
  }
}

</mosaic_0001>

<bundles_post_ra>
// kernel: tpu_custom_call.1
= control target key start
LH: loop header
LB: loop body
LE: loop exit
PB: predicated region body
PF: predicated region fallthrough
CT: control target
= control target key end

     0   :  { %13 = vsyncpa [#allocation7], 0  ;;  %s492_s0 = inlined_call_operand.hbm [shape: f32[8,256], index: 0, kind: input, shape index: {}]   ;;  %s493_s1 = inlined_call_operand.hbm [shape: f32[8,256], index: 1, kind: input, shape index: {}]   ;;  %s494_s2 = inlined_call_operand.hbm [shape: f32[8,256], index: 2, kind: input, shape index: {}]   ;;  %s495_s3 = inlined_call_operand.hbm [shape: f32[8,256], index: 3, kind: input, shape index: {}]   ;;  %s496_s4 = inlined_call_operand.vmem [shape: f32[1,8,1], index: 4, kind: output, shape index: {0}]   ;;  %s497_s5 = inlined_call_operand.vmem [shape: f32[1,8,1], index: 5, kind: output, shape index: {1}]   ;;  %s498_s6 = inlined_call_operand.vmem [shape: f32[1,8,1], index: 6, kind: output, shape index: {2}]   ;;  %s499_s7 = inlined_call_operand.vmem [shape: f32[1,8,1], index: 7, kind: output, shape index: {3}]  }
   0x1   :  { %14 = vsyncpa [#allocation9], 0 }
   0x2   :  { %15 = vsyncpa [#allocation12], 0  ;;  %s383_s24 = smov [#allocation8]   ;;  %s384_s26 = smov [#allocation6]  }
   0x3   :  { %s40_s25 = sshll.u32 %s383_s24, 4  ;;  %s26_s27 = sshll.u32 %s384_s26, 4  ;;  %s41_s25 = int_to_ptr.vmem [resolvable:$true] %s40_s25  ;;  %s27_s27 = int_to_ptr.vmem [resolvable:$true] %s26_s27 }
   0x4   :  { %s305_s28 = scalar_lea.vmem %s41_s25, 256  ;;  %p310_p1 = scmp.lt.s32.totalorder %s41_s25, %s41_s25 }
   0x5   :  { %p306_p0 = scmp.ne.s32.totalorder %s41_s25, %s305_s28  ;;  %p311_p2 = scmp.lt.s32.totalorder %s305_s28, %s305_s28 }
   0x7   :  { %p312_p3 = por %p311_p2, %p310_p1 }
   0x9   :  { %p313_p4 = pnand %p312_p3, %p306_p0 }
   0xb   :  { %316 = shalt.err (!%p313_p4)
}
   0xc   :  { %43 = dma.hbm_to_vmem [thread:$0]  %s493_s1, 256, %s41_s25, [#allocation9]  }
   0xd   :  { %s325_s8 = scalar_lea.vmem %s27_s27, 256  ;;  %p330_p6 = scmp.lt.s32.totalorder %s27_s27, %s27_s27 }
   0xe   :  { %p326_p5 = scmp.ne.s32.totalorder %s27_s27, %s325_s8  ;;  %p331_p7 = scmp.lt.s32.totalorder %s325_s8, %s325_s8 }
  0x10   :  { %p332_p8 = por %p331_p7, %p330_p6 }
  0x12   :  { %p333_p9 = pnand %p332_p8, %p326_p5 }
  0x14   :  { %336 = shalt.err (!%p333_p9)
}
  0x15   :  { %29 = dma.hbm_to_vmem [thread:$0]  %s492_s0, 256, %s27_s27, [#allocation7]  }
  0x16   :  { %s385_s11 = smov [#allocation10]   ;;  %s386_s13 = smov [#allocation11]  }
  0x17   :  { %s54_s12 = sshll.u32 %s385_s11, 4  ;;  %s68_s14 = sshll.u32 %s386_s13, 4  ;;  %s55_s12 = int_to_ptr.vmem [resolvable:$true] %s54_s12  ;;  %s69_s14 = int_to_ptr.vmem [resolvable:$true] %s68_s14 }
  0x18   :  { %s345_s15 = scalar_lea.vmem %s55_s12, 256  ;;  %p350_p11 = scmp.lt.s32.totalorder %s55_s12, %s55_s12 }
  0x19   :  { %p346_p10 = scmp.ne.s32.totalorder %s55_s12, %s345_s15  ;;  %p351_p12 = scmp.lt.s32.totalorder %s345_s15, %s345_s15 }
  0x1b   :  { %p352_p13 = por %p351_p12, %p350_p11 }
  0x1d   :  { %p353_p0 = pnand %p352_p13, %p346_p10 }
  0x1f   :  { %356 = shalt.err (!%p353_p0)
}
  0x20   :  { %57 = dma.hbm_to_vmem [thread:$0]  %s494_s2, 256, %s55_s12, [#allocation9]  }
  0x21   :  { %s365_s17 = scalar_lea.vmem %s69_s14, 256  ;;  %p370_p2 = scmp.lt.s32.totalorder %s69_s14, %s69_s14 }
  0x22   :  { %p366_p1 = scmp.ne.s32.totalorder %s69_s14, %s365_s17  ;;  %p371_p3 = scmp.lt.s32.totalorder %s365_s17, %s365_s17 }
  0x24   :  { %p372_p4 = por %p371_p3, %p370_p2 }
  0x26   :  { %p373_p5 = pnand %p372_p4, %p366_p1 }
  0x28   :  { %376 = shalt.err (!%p373_p5)
}
  0x29   :  { %71 = dma.hbm_to_vmem [thread:$0]  %s495_s3, 256, %s69_s14, [#allocation12]  }
  0x2a   :  { %377 = dma.done.wait [#allocation7], 256  }
  0x2b   :  { %378 = vsyncadd [#allocation7], 4294967040 }
  0x2c   :  { %379 = dma.done.wait [#allocation9], 512  }
  0x2d   :  { %380 = vsyncadd [#allocation9], 4294966784 }
  0x2e   :  { %381 = dma.done.wait [#allocation12], 256  }
  0x2f   :  { %382 = vsyncadd [#allocation12], 4294967040  ;;  %v439_v0 = vld [vmem:[#allocation10] sm:$0xff]  ;;  %v441_v1 = vld [vmem:[#allocation10 + $0x8] sm:$0xff]  ;;  %vm234_vm6 = vcmask 7168  }
  0x30   :  { %v152_v2 = vand.u32 2147483647, %v439_v0  ;;  %v153_v3 = vand.u32 2147483647, %v441_v1  ;;  %v104_v4 = vld [vmem:[#allocation6] sm:$0xff]  ;;  %v105_v7 = vld [vmem:[#allocation6 + $0x8] sm:$0xff] }
  0x31   :  { %v120_v10 = vand.u32 2147483647, %v104_v4  ;;  %v121_v11 = vand.u32 2147483647, %v105_v7  ;;  %v110_v24 = vld [vmem:[#allocation11] sm:$0xff]  ;;  %v111_v25 = vld [vmem:[#allocation11 + $0x8] sm:$0xff] }
  0x32   :  { %v154_v5 = vsub.f32 0.0, %v152_v2  ;;  %v155_v6 = vsub.f32 0.0, %v153_v3  ;;  %v106_v26 = vld [vmem:[#allocation8] sm:$0xff]  ;;  %v107_v27 = vld [vmem:[#allocation8 + $0x8] sm:$0xff]  ;;  %v162_v29 = vmul.f32 %v110_v24, %v439_v0  ;;  %v163_v32 = vmul.f32 %v111_v25, %v441_v1 }
  0x33   :  { %v122_v12 = vsub.f32 0.0, %v120_v10  ;;  %v123_v13 = vsub.f32 0.0, %v121_v11  ;;  %vm192_vm0 = vcmp.ge.f32.partialorder %v439_v0, 0.0  ;;  %v112_v33 = vsub.f32 %v104_v4, %v106_v26 }
  0x34   :  { %v156_v8 = vmul.f32 1.442695, %v154_v5  ;;  %v158_v9 = vmul.f32 1.442695, %v155_v6  ;;  %v114_v35 = vmax.f32 %v104_v4, 0.0  ;;  %v115_v36 = vmax.f32 %v105_v7, 0.0 }
  0x35   :  { %v124_v14 = vmul.f32 1.442695, %v122_v12  ;;  %v126_v15 = vmul.f32 1.442695, %v123_v13  ;;  %v116_v37 = vmul.f32 %v106_v26, %v104_v4  ;;  %v117_v38 = vmul.f32 %v107_v27, %v105_v7 }
  0x36   :  { %277 = vpow2.f32 %v156_v8  ;;  %vm193_vm1 = vcmp.ge.f32.partialorder %v441_v1, 0.0  ;;  %v160_v44 = vmax.f32 %v439_v0, 0.0  ;;  %v113_v47 = vsub.f32 %v105_v7, %v107_v27 }
  0x37   :  { %279 = vpow2.f32 %v158_v9  ;;  %v148_v49 = vmul.f32 %v112_v33, %v112_v33  ;;  %v161_v50 = vmax.f32 %v441_v1, 0.0  ;;  %v118_v53 = vsub.f32 %v114_v35, %v116_v37 }
  0x38   :  { %281 = vpow2.f32 %v124_v14  ;;  %v119_v54 = vsub.f32 %v115_v36, %v117_v38  ;;  %v149_v14 = vmul.f32 %v113_v47, %v113_v47 }
  0x39   :  { %283 = vpow2.f32 %v126_v15  ;;  %v164_v15 = vsub.f32 %v160_v44, %v162_v29 }
  0x43   :  { %v278_v16 = vpop.eup %277 }
  0x44   :  { %v445_v17 = vpop.eup %279  ;;  %v166_v18 = vadd.f32 1.0, %v278_v16  ;;  %v169_v28 = vmul.f32 -0.5, %v278_v16  ;;  %v172_v41 = vand.u32 2147483647, %v278_v16 }
  0x45   :  { %v175_v19 = vadd.f32 1.0, %v445_v17  ;;  %v282_v20 = vpop.eup %281  ;;  %v178_v31 = vmul.f32 -0.5, %v445_v17  ;;  %v181_v55 = vand.u32 2147483647, %v445_v17 }
  0x46   :  { %285 = vrcp.f32 %v166_v18  ;;  %v284_v21 = vpop.eup %283  ;;  %v128_v22 = vadd.f32 1.0, %v282_v20  ;;  %v131_v30 = vmul.f32 -0.5, %v282_v20  ;;  %v134_v39 = vand.u32 2147483647, %v282_v20 }
  0x47   :  { %287 = vrcp.f32 %v175_v19  ;;  %v137_v23 = vadd.f32 1.0, %v284_v21  ;;  %v140_v34 = vmul.f32 -0.5, %v284_v21  ;;  %v170_v40 = vadd.f32 1.0, %v169_v28 }
  0x48   :  { %289 = vlog2.f32 %v166_v18  ;;  %v132_v42 = vadd.f32 1.0, %v131_v30  ;;  %v143_v43 = vand.u32 2147483647, %v284_v21  ;;  %v179_v45 = vadd.f32 1.0, %v178_v31 }
  0x49   :  { %291 = vlog2.f32 %v128_v22  ;;  %v141_v48 = vadd.f32 1.0, %v140_v34  ;;  %vm457_vm2 = vcmp.lt.f32.partialorder %v134_v39, 0.0004427343  ;;  %v171_v59 = vmul.f32 %v278_v16, %v170_v40 }
  0x4a   :  { %293 = vlog2.f32 %v137_v23  ;;  %vm461_vm3 = vcmp.lt.f32.partialorder %v172_v41, 0.0004427343  ;;  %v133_v62 = vmul.f32 %v282_v20, %v132_v42  ;;  %vm467_vm4 = vcmp.lt.f32.partialorder %v143_v43, 0.0004427343 }
  0x4b   :  { %295 = vlog2.f32 %v175_v19  ;;  %v180_v2 = vmul.f32 %v445_v17, %v179_v45  ;;  %v142_v6 = vmul.f32 %v284_v21, %v141_v48  ;;  %vm182_vm5 = vcmp.lt.f32.partialorder %v181_v55, 0.0004427343 }
  0x4c   :  { %v165_v18 = vsub.f32 %v161_v50, %v163_v32 }
  0x53   :  { %v286_v46 = vpop.eup %285 }
  0x54   :  { %v288_v51 = vpop.eup %287  ;;  %v194_v52 = vmul.f32 %v286_v46, %v278_v16 }
  0x55   :  { %v290_v56 = vpop.eup %289  ;;  %v195_v57 = vmul.f32 %v288_v51, %v445_v17 }
  0x56   :  { %v196_v61 = vsel %vm192_vm0, %v286_v46, %v194_v52  ;;  %v292_v3 = vpop.eup %291  ;;  %v168_v7 = vmul.f32 0.6931472, %v290_v56 }
  0x57   :  { %v197_v4 = vsel %vm193_vm1, %v288_v51, %v195_v57  ;;  %v198_v5 = vmul.f32 %v196_v61, %v110_v24  ;;  %v294_v8 = vpop.eup %293  ;;  %v130_v10 = vmul.f32 0.6931472, %v292_v3  ;;  %v200_v11 = vadd.f32 %v196_v61, %v110_v24 }
  0x58   :  { %v199_v9 = vmul.f32 %v197_v4, %v111_v25  ;;  %v201_v0 = vadd.f32 %v197_v4, %v111_v25  ;;  %v296_v12 = vpop.eup %295  ;;  %v139_v13 = vmul.f32 0.6931472, %v294_v8  ;;  %v174_v21 = vsel %vm461_vm3, %v171_v59, %v168_v7 }
  0x59   :  { %v136_v17 = vsel %vm457_vm2, %v133_v62, %v130_v10  ;;  %v177_v1 = vmul.f32 0.6931472, %v296_v12  ;;  %v184_v27 = vadd.f32 %v174_v21, %v164_v15 }
  0x5a   :  { %v244_v16 = vadd.f32 %v199_v9, %v198_v5  ;;  %v145_v19 = vsel %vm467_vm4, %v142_v6, %v139_v13  ;;  %v146_v20 = vadd.f32 %v136_v17, %v118_v53  ;;  %v250_v23 = vadd.f32 %v201_v0, %v200_v11 }
  0x5b   :  { %v147_v22 = vadd.f32 %v145_v19, %v119_v54  ;;  %v183_v24 = vsel %vm182_vm5, %v180_v2, %v177_v1 }
  0x5c   :  { %245 = vadd.xlane.f32.xlu1 %v244_v16  ;;  %v150_v25 = vadd.f32 %v148_v49, %v146_v20  ;;  %v185_v28 = vadd.f32 %v183_v24, %v165_v18 }
  0x5d   :  { %v151_v26 = vadd.f32 %v149_v14, %v147_v22 }
  0x5e   :  { %v238_v30 = vadd.f32 %v185_v28, %v184_v27 }
  0x5f   :  { %v231_v29 = vadd.f32 %v151_v26, %v150_v25 }
  0x60   :  { %251 = vadd.xlane.f32.xlu1 %v250_v23 }
  0x61   :  { %232 = vadd.xlane.f32.xlu0 %v231_v29 }
  0x65   :  { %239 = vadd.xlane.f32.xlu0 %v238_v30 }
  0xe5   :  { %v246_v31 = vpop.xlane.xlu1 %245 }
  0xe6   :  { %247 = vst.msk [vmem:[%s498_s6] sm:$0xff] %vm234_vm6, %v246_v31 }
  0xe9   :  { %v252_v32 = vpop.xlane.xlu1 %251 }
  0xea   :  { %253 = vst.msk [vmem:[%s499_s7] sm:$0xff] %vm234_vm6, %v252_v32  ;;  %v233_v33 = vpop.xlane.xlu0 %232 }
  0xeb   :  { %235 = vst.msk [vmem:[%s496_s4] sm:$0xff] %vm234_vm6, %v233_v33 }
  0xee   :  { %v240_v34 = vpop.xlane.xlu0 %239 }
  0xef   :  { %241 = vst.msk [vmem:[%s497_s5] sm:$0xff] %vm234_vm6, %v240_v34 }
  0xf0   :  { %270 = vsyncpa [#allocation7], 1 }
  0xf1   :  { %271 = vsyncpa [#allocation9], 1 }
  0xf2   :  { %272 = vsyncpa [#allocation12], 1 }

</bundles_post_ra>
